<compile_context>
chip_gen: v6e
topology: v6e:2x2x1
jax: 0.10.0
libtpu: 0.0.40
codegen_flags: <defaults>
</compile_context>

<pallas_src>
import jax
import jax.numpy as jnp
from jax import lax
from jax.experimental import pallas as pl
from jax.experimental.pallas import tpu as pltpu


def _leaky_relu(v, slope=0.2):
    return jnp.where(v >= 0, v, slope * v)


def critic_kernel(x_ref, y_ref, embed_ref, w1x_ref, w1e_ref, w2_ref, w3_ref,
                  b3_ref, o_ref):
    # x_ref:     (TB, INPUT)            y_ref:   (TB, 1) int32
    # embed_ref: (LABEL, EMB)           w1x_ref: (INPUT, H0)
    # w1e_ref:   (EMB, H0)              w2_ref:  (H0, H1)
    # w3_ref:    (1, H1)                b3_ref:  (1, 1)  in SMEM
    # o_ref:     (1, TB)  -- lane-dense output (batch on the lane axis)
    x = x_ref[...]
    y = y_ref[...]                                   # (TB, 1) int32 labels
    emb_tbl = embed_ref[...]                         # (LABEL, EMB)
    n_label = emb_tbl.shape[0]

    # Exact in-kernel embedding gather: VPU select-accumulate over the (small)
    # label count. Keeps the MXU free and avoids matmul rounding of the rows.
    # TODO(synk): for large LABEL counts switch to a one-hot MXU matmul.
    y_emb = jnp.zeros((x.shape[0], emb_tbl.shape[1]), jnp.float32)
    for l in range(n_label):                         # static, unrolled (LABEL=10)
        mask = (y == l).astype(jnp.float32)          # (TB, 1) exact 0/1
        y_emb = y_emb + mask * emb_tbl[l:l + 1, :]   # (TB, EMB)

    # cat([x, y_emb], 1) @ w1  ==  x @ w1_x + y_emb @ w1_e  (no concat built)
    h1 = (jnp.dot(x, w1x_ref[...], preferred_element_type=jnp.float32)
          + jnp.dot(y_emb, w1e_ref[...], preferred_element_type=jnp.float32))
    h1 = _leaky_relu(h1)

    h2 = jnp.dot(h1, w2_ref[...], preferred_element_type=jnp.float32)
    h2 = _leaky_relu(h2)

    # Final (H1 -> 1) layer, lane-dense: (1,H1) contracted with (TB,H1) -> (1,TB).
    out_row = lax.dot_general(
        w3_ref[...], h2,
        dimension_numbers=(((1,), (1,)), ((), ())),
        preferred_element_type=jnp.float32)
    o_ref[...] = (out_row + b3_ref[0, 0]).astype(o_ref.dtype)


def critic_forward(x, y, params, *, batch_tile=256):
    """Equivalent of Critic.forward(x, y): LeakyReLU MLP on cat([x, embed(y)])."""
    embed_tbl = params["embed"]
    w1, w2, w3, b3 = params["w1"], params["w2"], params["w3"], params["b3"]

    B, input_dim = x.shape
    label, emb_dim = embed_tbl.shape
    h0 = w1.shape[1]
    h1d = w2.shape[1]

    # Split w1 so the (x, y_embed) concat never materializes anywhere.
    w1x = w1[:input_dim]
    w1e = w1[input_dim:]

    y2 = y.reshape(B, 1).astype(jnp.int32)

    tb = B if B <= batch_tile else batch_tile        # batch tile (rows / block)
    grid = (pl.cdiv(B, tb),)

    flops = 2 * B * (input_dim * h0 + emb_dim * h0 + h0 * h1d + h1d)
    bytes_accessed = 4 * (x.size + y2.size + embed_tbl.size + w1.size
                          + w2.size + w3.size + b3.size + B)

    out = pl.pallas_call(
        critic_kernel,
        grid=grid,
        in_specs=[
            pl.BlockSpec((tb, input_dim), lambda i: (i, 0)),     # x (batch-tiled)
            pl.BlockSpec((tb, 1), lambda i: (i, 0)),             # y labels
            pl.BlockSpec((label, emb_dim), lambda i: (0, 0)),    # embedding table
            pl.BlockSpec((input_dim, h0), lambda i: (0, 0)),     # w1[:input]
            pl.BlockSpec((emb_dim, h0), lambda i: (0, 0)),       # w1[input:]
            pl.BlockSpec((h0, h1d), lambda i: (0, 0)),           # w2
            pl.BlockSpec((1, h1d), lambda i: (0, 0)),            # w3 (row form)
            pl.BlockSpec(memory_space=pltpu.MemorySpace.SMEM),   # b3 scalar
        ],
        out_specs=pl.BlockSpec((1, tb), lambda i: (0, i)),       # lane-dense out
        out_shape=jax.ShapeDtypeStruct((1, B), jnp.float32),
        compiler_params=pltpu.CompilerParams(
            dimension_semantics=("parallel",)),
        cost_estimate=pl.CostEstimate(
            flops=flops, transcendentals=0, bytes_accessed=bytes_accessed),
    )(x, y2, embed_tbl, w1x, w1e, w2, w3, b3)

    return out.reshape(B, 1)                         # match PyTorch (B, 1)


def init_params(key, input_dim, hidden, embedding, label):
    """PyTorch-like init: U(+-1/sqrt(fan_in)) linears, N(0,1) embedding."""
    k0, k1, k2, k3, k4 = jax.random.split(key, 5)
    in_dim = input_dim + embedding
    h0, h1d = hidden

    def lin(k, fan_in, shape):
        bound = 1.0 / (float(fan_in) ** 0.5)
        return jax.random.uniform(k, shape, jnp.float32, -bound, bound)

    return {
        "embed": jax.random.normal(k0, (label, embedding), jnp.float32),
        "w1": lin(k1, in_dim, (in_dim, h0)),     # stored (fan_in, fan_out): x @ w1
        "w2": lin(k2, h0, (h0, h1d)),
        "w3": lin(k3, h1d, (1, h1d)),            # PyTorch (out, in) layout
        "b3": lin(k4, h1d, (1, 1)),
    }


if __name__ == "__main__":
    # Small shapes consistent with Critic(input, hidden, embedding, label)
    B = 8
    INPUT = 16
    HIDDEN = (32, 32)
    EMBEDDING = 16
    LABEL = 10

    key = jax.random.PRNGKey(0)
    kp, kx, ky = jax.random.split(key, 3)
    params = init_params(kp, INPUT, HIDDEN, EMBEDDING, LABEL)

    x = jax.random.normal(kx, (B, INPUT), jnp.float32)
    y = jax.random.randint(ky, (B,), 0, LABEL, jnp.int32)

    fwd = jax.jit(critic_forward)
    out = fwd(x, y, params)
    jax.block_until_ready(out)

    # Pure-JAX reference of the exact PyTorch forward (gather -> concat -> MLP).
    y_embed = jnp.take(params["embed"], y, axis=0)
    xc = jnp.concatenate([x, y_embed], axis=1)
    r = _leaky_relu(xc @ params["w1"])
    r = _leaky_relu(r @ params["w2"])
    ref = r @ params["w3"].T + params["b3"]

    assert out.shape == (B, 1)
    assert jnp.allclose(out, ref, atol=1e-4, rtol=1e-4)

    print("KERNEL_OK")
</pallas_src>

<mosaic_0001>
module attributes {stable_mosaic.version = 11 : i64} {
  func.func @critic_kernel(%arg0: i32, %arg1: memref<8x16xf32, #tpu.memory_space<vmem>>, %arg2: memref<8x1xi32, #tpu.memory_space<vmem>>, %arg3: memref<10x16xf32, #tpu.memory_space<vmem>>, %arg4: memref<16x32xf32, #tpu.memory_space<vmem>>, %arg5: memref<16x32xf32, #tpu.memory_space<vmem>>, %arg6: memref<32x32xf32, #tpu.memory_space<vmem>>, %arg7: memref<1x32xf32, #tpu.memory_space<vmem>>, %arg8: memref<1x1xf32, #tpu.memory_space<smem>>, %arg9: memref<1x8xf32, #tpu.memory_space<vmem>>) attributes {dimension_semantics = [#tpu.dimension_semantics<parallel>], iteration_bounds = array<i64: 1>, scalar_prefetch = 0 : i64, scratch_operands = 0 : i64, tpu.core_type = #tpu.core_type<tc>, window_params = [{transform_indices = @transform_0, window_bounds = array<i64: 8, 16>}, {transform_indices = @transform_1, window_bounds = array<i64: 8, 1>}, {pipeline_mode = #tpu.pipeline_mode<synchronous>, transform_indices = @transform_2, window_bounds = array<i64: 10, 16>}, {pipeline_mode = #tpu.pipeline_mode<synchronous>, transform_indices = @transform_3, window_bounds = array<i64: 16, 32>}, {pipeline_mode = #tpu.pipeline_mode<synchronous>, transform_indices = @transform_4, window_bounds = array<i64: 16, 32>}, {pipeline_mode = #tpu.pipeline_mode<synchronous>, transform_indices = @transform_5, window_bounds = array<i64: 32, 32>}, {pipeline_mode = #tpu.pipeline_mode<synchronous>, transform_indices = @transform_6, window_bounds = array<i64: 1, 32>}, {transform_indices = @transform_7, window_bounds = array<i64: 1, 1>}, {transform_indices = @transform_8, window_bounds = array<i64: 1, 8>}]} {
    %c0 = arith.constant 0 : index
    %c0_0 = arith.constant 0 : index
    %0 = vector.load %arg1[%c0, %c0_0] : memref<8x16xf32, #tpu.memory_space<vmem>>, vector<8x16xf32>
    %c0_1 = arith.constant 0 : index
    %c0_2 = arith.constant 0 : index
    %1 = vector.load %arg2[%c0_1, %c0_2] : memref<8x1xi32, #tpu.memory_space<vmem>>, vector<8x1xi32>
    %c0_3 = arith.constant 0 : index
    %c0_4 = arith.constant 0 : index
    %2 = vector.load %arg3[%c0_3, %c0_4] : memref<10x16xf32, #tpu.memory_space<vmem>>, vector<10x16xf32>
    %cst = arith.constant 0.000000e+00 : f32
    %3 = vector.broadcast %cst : f32 to vector<8x16xf32>
    %c0_i32 = arith.constant 0 : i32
    %4 = vector.broadcast %c0_i32 : i32 to vector<8x1xi32>
    %5 = arith.cmpi eq, %1, %4 : vector<8x1xi32>
    %6 = arith.extui %5 : vector<8x1xi1> to vector<8x1xi32>
    %7 = arith.sitofp %6 : vector<8x1xi32> to vector<8x1xf32>
    %8 = vector.extract_strided_slice %2 {offsets = [0, 0], sizes = [1, 16], strides = [1, 1]} : vector<10x16xf32> to vector<1x16xf32>
    %9 = vector.broadcast %7 : vector<8x1xf32> to vector<8x16xf32>
    %10 = vector.broadcast %8 : vector<1x16xf32> to vector<8x16xf32>
    %11 = arith.mulf %9, %10 : vector<8x16xf32>
    %12 = arith.addf %3, %11 : vector<8x16xf32>
    %c1_i32 = arith.constant 1 : i32
    %13 = vector.broadcast %c1_i32 : i32 to vector<8x1xi32>
    %14 = arith.cmpi eq, %1, %13 : vector<8x1xi32>
    %15 = arith.extui %14 : vector<8x1xi1> to vector<8x1xi32>
    %16 = arith.sitofp %15 : vector<8x1xi32> to vector<8x1xf32>
    %17 = vector.extract_strided_slice %2 {offsets = [1, 0], sizes = [1, 16], strides = [1, 1]} : vector<10x16xf32> to vector<1x16xf32>
    %18 = vector.broadcast %16 : vector<8x1xf32> to vector<8x16xf32>
    %19 = vector.broadcast %17 : vector<1x16xf32> to vector<8x16xf32>
    %20 = arith.mulf %18, %19 : vector<8x16xf32>
    %21 = arith.addf %12, %20 : vector<8x16xf32>
    %c2_i32 = arith.constant 2 : i32
    %22 = vector.broadcast %c2_i32 : i32 to vector<8x1xi32>
    %23 = arith.cmpi eq, %1, %22 : vector<8x1xi32>
    %24 = arith.extui %23 : vector<8x1xi1> to vector<8x1xi32>
    %25 = arith.sitofp %24 : vector<8x1xi32> to vector<8x1xf32>
    %26 = vector.extract_strided_slice %2 {offsets = [2, 0], sizes = [1, 16], strides = [1, 1]} : vector<10x16xf32> to vector<1x16xf32>
    %27 = vector.broadcast %25 : vector<8x1xf32> to vector<8x16xf32>
    %28 = vector.broadcast %26 : vector<1x16xf32> to vector<8x16xf32>
    %29 = arith.mulf %27, %28 : vector<8x16xf32>
    %30 = arith.addf %21, %29 : vector<8x16xf32>
    %c3_i32 = arith.constant 3 : i32
    %31 = vector.broadcast %c3_i32 : i32 to vector<8x1xi32>
    %32 = arith.cmpi eq, %1, %31 : vector<8x1xi32>
    %33 = arith.extui %32 : vector<8x1xi1> to vector<8x1xi32>
    %34 = arith.sitofp %33 : vector<8x1xi32> to vector<8x1xf32>
    %35 = vector.extract_strided_slice %2 {offsets = [3, 0], sizes = [1, 16], strides = [1, 1]} : vector<10x16xf32> to vector<1x16xf32>
    %36 = vector.broadcast %34 : vector<8x1xf32> to vector<8x16xf32>
    %37 = vector.broadcast %35 : vector<1x16xf32> to vector<8x16xf32>
    %38 = arith.mulf %36, %37 : vector<8x16xf32>
    %39 = arith.addf %30, %38 : vector<8x16xf32>
    %c4_i32 = arith.constant 4 : i32
    %40 = vector.broadcast %c4_i32 : i32 to vector<8x1xi32>
    %41 = arith.cmpi eq, %1, %40 : vector<8x1xi32>
    %42 = arith.extui %41 : vector<8x1xi1> to vector<8x1xi32>
    %43 = arith.sitofp %42 : vector<8x1xi32> to vector<8x1xf32>
    %44 = vector.extract_strided_slice %2 {offsets = [4, 0], sizes = [1, 16], strides = [1, 1]} : vector<10x16xf32> to vector<1x16xf32>
    %45 = vector.broadcast %43 : vector<8x1xf32> to vector<8x16xf32>
    %46 = vector.broadcast %44 : vector<1x16xf32> to vector<8x16xf32>
    %47 = arith.mulf %45, %46 : vector<8x16xf32>
    %48 = arith.addf %39, %47 : vector<8x16xf32>
    %c5_i32 = arith.constant 5 : i32
    %49 = vector.broadcast %c5_i32 : i32 to vector<8x1xi32>
    %50 = arith.cmpi eq, %1, %49 : vector<8x1xi32>
    %51 = arith.extui %50 : vector<8x1xi1> to vector<8x1xi32>
    %52 = arith.sitofp %51 : vector<8x1xi32> to vector<8x1xf32>
    %53 = vector.extract_strided_slice %2 {offsets = [5, 0], sizes = [1, 16], strides = [1, 1]} : vector<10x16xf32> to vector<1x16xf32>
    %54 = vector.broadcast %52 : vector<8x1xf32> to vector<8x16xf32>
    %55 = vector.broadcast %53 : vector<1x16xf32> to vector<8x16xf32>
    %56 = arith.mulf %54, %55 : vector<8x16xf32>
    %57 = arith.addf %48, %56 : vector<8x16xf32>
    %c6_i32 = arith.constant 6 : i32
    %58 = vector.broadcast %c6_i32 : i32 to vector<8x1xi32>
    %59 = arith.cmpi eq, %1, %58 : vector<8x1xi32>
    %60 = arith.extui %59 : vector<8x1xi1> to vector<8x1xi32>
    %61 = arith.sitofp %60 : vector<8x1xi32> to vector<8x1xf32>
    %62 = vector.extract_strided_slice %2 {offsets = [6, 0], sizes = [1, 16], strides = [1, 1]} : vector<10x16xf32> to vector<1x16xf32>
    %63 = vector.broadcast %61 : vector<8x1xf32> to vector<8x16xf32>
    %64 = vector.broadcast %62 : vector<1x16xf32> to vector<8x16xf32>
    %65 = arith.mulf %63, %64 : vector<8x16xf32>
    %66 = arith.addf %57, %65 : vector<8x16xf32>
    %c7_i32 = arith.constant 7 : i32
    %67 = vector.broadcast %c7_i32 : i32 to vector<8x1xi32>
    %68 = arith.cmpi eq, %1, %67 : vector<8x1xi32>
    %69 = arith.extui %68 : vector<8x1xi1> to vector<8x1xi32>
    %70 = arith.sitofp %69 : vector<8x1xi32> to vector<8x1xf32>
    %71 = vector.extract_strided_slice %2 {offsets = [7, 0], sizes = [1, 16], strides = [1, 1]} : vector<10x16xf32> to vector<1x16xf32>
    %72 = vector.broadcast %70 : vector<8x1xf32> to vector<8x16xf32>
    %73 = vector.broadcast %71 : vector<1x16xf32> to vector<8x16xf32>
    %74 = arith.mulf %72, %73 : vector<8x16xf32>
    %75 = arith.addf %66, %74 : vector<8x16xf32>
    %c8_i32 = arith.constant 8 : i32
    %76 = vector.broadcast %c8_i32 : i32 to vector<8x1xi32>
    %77 = arith.cmpi eq, %1, %76 : vector<8x1xi32>
    %78 = arith.extui %77 : vector<8x1xi1> to vector<8x1xi32>
    %79 = arith.sitofp %78 : vector<8x1xi32> to vector<8x1xf32>
    %80 = vector.extract_strided_slice %2 {offsets = [8, 0], sizes = [1, 16], strides = [1, 1]} : vector<10x16xf32> to vector<1x16xf32>
    %81 = vector.broadcast %79 : vector<8x1xf32> to vector<8x16xf32>
    %82 = vector.broadcast %80 : vector<1x16xf32> to vector<8x16xf32>
    %83 = arith.mulf %81, %82 : vector<8x16xf32>
    %84 = arith.addf %75, %83 : vector<8x16xf32>
    %c9_i32 = arith.constant 9 : i32
    %85 = vector.broadcast %c9_i32 : i32 to vector<8x1xi32>
    %86 = arith.cmpi eq, %1, %85 : vector<8x1xi32>
    %87 = arith.extui %86 : vector<8x1xi1> to vector<8x1xi32>
    %88 = arith.sitofp %87 : vector<8x1xi32> to vector<8x1xf32>
    %89 = vector.extract_strided_slice %2 {offsets = [9, 0], sizes = [1, 16], strides = [1, 1]} : vector<10x16xf32> to vector<1x16xf32>
    %90 = vector.broadcast %88 : vector<8x1xf32> to vector<8x16xf32>
    %91 = vector.broadcast %89 : vector<1x16xf32> to vector<8x16xf32>
    %92 = arith.mulf %90, %91 : vector<8x16xf32>
    %93 = arith.addf %84, %92 : vector<8x16xf32>
    %c0_5 = arith.constant 0 : index
    %c0_6 = arith.constant 0 : index
    %94 = vector.load %arg4[%c0_5, %c0_6] : memref<16x32xf32, #tpu.memory_space<vmem>>, vector<16x32xf32>
    %cst_7 = arith.constant dense<0.000000e+00> : vector<8x32xf32>
    %95 = tpu.matmul %0, %94, %cst_7 {dimension_numbers = #tpu.dot_dimension_numbers<[1], [0], [0], [1], [0, 0, 1, 1], [], []>} : vector<8x16xf32>, vector<16x32xf32>, vector<8x32xf32> -> vector<8x32xf32>
    %c0_8 = arith.constant 0 : index
    %c0_9 = arith.constant 0 : index
    %96 = vector.load %arg5[%c0_8, %c0_9] : memref<16x32xf32, #tpu.memory_space<vmem>>, vector<16x32xf32>
    %cst_10 = arith.constant dense<0.000000e+00> : vector<8x32xf32>
    %97 = tpu.matmul %93, %96, %cst_10 {dimension_numbers = #tpu.dot_dimension_numbers<[1], [0], [0], [1], [0, 0, 1, 1], [], []>} : vector<8x16xf32>, vector<16x32xf32>, vector<8x32xf32> -> vector<8x32xf32>
    %98 = arith.addf %95, %97 : vector<8x32xf32>
    %cst_11 = arith.constant 0.000000e+00 : f32
    %99 = vector.broadcast %cst_11 : f32 to vector<8x32xf32>
    %100 = arith.cmpf oge, %98, %99 : vector<8x32xf32>
    %cst_12 = arith.constant 2.000000e-01 : f32
    %101 = vector.broadcast %cst_12 : f32 to vector<8x32xf32>
    %102 = arith.mulf %101, %98 : vector<8x32xf32>
    %103 = arith.select %100, %98, %102 : vector<8x32xi1>, vector<8x32xf32>
    %c0_13 = arith.constant 0 : index
    %c0_14 = arith.constant 0 : index
    %104 = vector.load %arg6[%c0_13, %c0_14] : memref<32x32xf32, #tpu.memory_space<vmem>>, vector<32x32xf32>
    %cst_15 = arith.constant dense<0.000000e+00> : vector<8x32xf32>
    %105 = tpu.matmul %103, %104, %cst_15 {dimension_numbers = #tpu.dot_dimension_numbers<[1], [0], [0], [1], [0, 0, 1, 1], [], []>} : vector<8x32xf32>, vector<32x32xf32>, vector<8x32xf32> -> vector<8x32xf32>
    %cst_16 = arith.constant 0.000000e+00 : f32
    %106 = vector.broadcast %cst_16 : f32 to vector<8x32xf32>
    %107 = arith.cmpf oge, %105, %106 : vector<8x32xf32>
    %cst_17 = arith.constant 2.000000e-01 : f32
    %108 = vector.broadcast %cst_17 : f32 to vector<8x32xf32>
    %109 = arith.mulf %108, %105 : vector<8x32xf32>
    %110 = arith.select %107, %105, %109 : vector<8x32xi1>, vector<8x32xf32>
    %c0_18 = arith.constant 0 : index
    %c0_19 = arith.constant 0 : index
    %111 = vector.load %arg7[%c0_18, %c0_19] : memref<1x32xf32, #tpu.memory_space<vmem>>, vector<1x32xf32>
    %cst_20 = arith.constant dense<0.000000e+00> : vector<1x8xf32>
    %112 = tpu.matmul %111, %110, %cst_20 {dimension_numbers = #tpu.dot_dimension_numbers<[1], [1], [0], [0], [0, 0, 1, 0], [], []>} : vector<1x32xf32>, vector<8x32xf32>, vector<1x8xf32> -> vector<1x8xf32>
    %c0_21 = arith.constant 0 : index
    %c0_22 = arith.constant 0 : index
    %113 = memref.load %arg8[%c0_21, %c0_22] : memref<1x1xf32, #tpu.memory_space<smem>>
    %114 = vector.broadcast %113 : f32 to vector<1x8xf32>
    %115 = arith.addf %112, %114 : vector<1x8xf32>
    %c0_23 = arith.constant 0 : index
    %c0_24 = arith.constant 0 : index
    %116 = vector.load %arg9[%c0_23, %c0_24] : memref<1x8xf32, #tpu.memory_space<vmem>>, vector<1x8xf32>
    tpu.vector_store %arg9[%c0_23, %c0_24], %115 {strides = array<i32>} : memref<1x8xf32, #tpu.memory_space<vmem>>, vector<1x8xf32>,
    return
  }
  func.func @transform_0(%arg0: i32) -> (i32, i32) {
    %c0_i32 = arith.constant 0 : i32
    %c0_i32_0 = arith.constant 0 : i32
    return %arg0, %c0_i32 : i32, i32
  }
  func.func @transform_1(%arg0: i32) -> (i32, i32) {
    %c0_i32 = arith.constant 0 : i32
    %c0_i32_0 = arith.constant 0 : i32
    return %arg0, %c0_i32 : i32, i32
  }
  func.func @transform_2(%arg0: i32) -> (i32, i32) {
    %c0_i32 = arith.constant 0 : i32
    %c0_i32_0 = arith.constant 0 : i32
    %c0_i32_1 = arith.constant 0 : i32
    return %c0_i32, %c0_i32_0 : i32, i32
  }
  func.func @transform_3(%arg0: i32) -> (i32, i32) {
    %c0_i32 = arith.constant 0 : i32
    %c0_i32_0 = arith.constant 0 : i32
    %c0_i32_1 = arith.constant 0 : i32
    return %c0_i32, %c0_i32_0 : i32, i32
  }
  func.func @transform_4(%arg0: i32) -> (i32, i32) {
    %c0_i32 = arith.constant 0 : i32
    %c0_i32_0 = arith.constant 0 : i32
    %c0_i32_1 = arith.constant 0 : i32
    return %c0_i32, %c0_i32_0 : i32, i32
  }
  func.func @transform_5(%arg0: i32) -> (i32, i32) {
    %c0_i32 = arith.constant 0 : i32
    %c0_i32_0 = arith.constant 0 : i32
    %c0_i32_1 = arith.constant 0 : i32
    return %c0_i32, %c0_i32_0 : i32, i32
  }
  func.func @transform_6(%arg0: i32) -> (i32, i32) {
    %c0_i32 = arith.constant 0 : i32
    %c0_i32_0 = arith.constant 0 : i32
    %c0_i32_1 = arith.constant 0 : i32
    return %c0_i32, %c0_i32_0 : i32, i32
  }
  func.func @transform_7(%arg0: i32) -> (i32, i32) {
    %c0_i32 = arith.constant 0 : i32
    %c0_i32_0 = arith.constant 0 : i32
    %c0_i32_1 = arith.constant 0 : i32
    return %c0_i32, %c0_i32_0 : i32, i32
  }
  func.func @transform_8(%arg0: i32) -> (i32, i32) {
    %c0_i32 = arith.constant 0 : i32
    %c0_i32_0 = arith.constant 0 : i32
    return %c0_i32, %arg0 : i32, i32
  }
}

</mosaic_0001>

<bundles_post_ra>
// kernel: critic_forward.1
= control target key start
LH: loop header
LB: loop body
LE: loop exit
PB: predicated region body
PF: predicated region fallthrough
CT: control target
= control target key end

     0   :  { %s719_s0 = inlined_call_operand.vmem [shape: f32[8,16], index: 0, kind: input, shape index: {}]   ;;  %s720_s1 = inlined_call_operand.vmem [shape: s32[8,1], index: 1, kind: input, shape index: {}]   ;;  %s721_s2 = inlined_call_operand.vmem [shape: f32[10,16], index: 2, kind: input, shape index: {}]   ;;  %s722_s3 = inlined_call_operand.vmem [shape: f32[16,32], index: 3, kind: input, shape index: {}]   ;;  %s723_s4 = inlined_call_operand.vmem [shape: f32[16,32], index: 4, kind: input, shape index: {}]   ;;  %s724_s5 = inlined_call_operand.vmem [shape: f32[32,32], index: 5, kind: input, shape index: {}]   ;;  %s725_s6 = inlined_call_operand.vmem [shape: f32[1,32], index: 6, kind: input, shape index: {}]   ;;  %s726_s7 = inlined_call_operand.<no memory space> [shape: f32[1,1], index: 7, kind: input, shape index: {}]   ;;  %s727_s8 = inlined_call_operand.hbm [shape: f32[1,8], index: 8, kind: output, shape index: {}]  }
   0x1   :  { %v32_v0 = vld [vmem:[%s720_s1] sm:$0xff] }
   0x2   :  { %14 = vsyncpa [#allocation4], 0  ;;  %v596_v1 = vmov 0   ;;  %vm77_vm0 = vcmp.eq.s32.totalorder %v32_v0, 3  ;;  %vm35_vm1 = vcmp.eq.s32.totalorder %v32_v0, 0  ;;  %vm49_vm2 = vcmp.eq.s32.totalorder %v32_v0, 1 }
   0x3   :  { %573 = vset.pattern.permute.xlu1 %v596_v1  ;;  %567 = vset.pattern.permute.xlu0 %v596_v1  ;;  %vm91_vm3 = vcmp.eq.s32.totalorder %v32_v0, 4  ;;  %v597_v2 = vmov 0.0   ;;  %vm63_vm4 = vcmp.eq.s32.totalorder %v32_v0, 2  ;;  %vm119_vm5 = vcmp.eq.s32.totalorder %v32_v0, 6  ;;  %v176_v13 = vld [vmem:[%s722_s3 + $0x8] sm:$0xff]  ;;  %v175_v16 = vld [vmem:[%s722_s3] sm:$0xff] }
   0x4   :  { %v508_v3 = vsel %vm77_vm0, 1.0, %v597_v2  ;;  %v505_v4 = vsel %vm35_vm1, 1.0, %v597_v2  ;;  %v506_v5 = vsel %vm49_vm2, 1.0, %v597_v2  ;;  %540 = vmatprep.subr.mxu1 %v597_v2  ;;  %533 = vmatprep.subr.mxu0 %v597_v2  ;;  %v509_v7 = vsel %vm91_vm3, 1.0, %v597_v2  ;;  %v178_v15 = vld [vmem:[%s723_s4 + $0x8] sm:$0xff]  ;;  %v31_v17 = vld [vmem:[%s719_s0] sm:$0xff] }
   0x5   :  { %82 = vperm.xlu1 %573, %v508_v3   ;;  %v568_v6 = vpack.i.bf16 %v506_v5, %v505_v4  ;;  %v507_v8 = vsel %vm63_vm4, 1.0, %v597_v2  ;;  %vm105_vm6 = vcmp.eq.s32.totalorder %v32_v0, 5  ;;  %v511_v9 = vsel %vm119_vm5, 1.0, %v597_v2  ;;  %541 = vmatpush3.msra.mxu1 %v176_v13  ;;  %v177_v18 = vld [vmem:[%s723_s4] sm:$0xff]  ;;  %v34_v53 = vld [vmem:[%s721_s2 + $0x8] sm:$0x3] }
   0x6   :  { %vm147_vm7 = vcmp.eq.s32.totalorder %v32_v0, 8  ;;  %v510_v10 = vsel %vm105_vm6, 1.0, %v597_v2  ;;  %vm133_vm8 = vcmp.eq.s32.totalorder %v32_v0, 7  ;;  %vm161_vm9 = vcmp.eq.s32.totalorder %v32_v0, 9  ;;  %542 = vmatprep.subr.mxu1 %v597_v2  ;;  %534 = vmatpush3.msra.mxu0 %v178_v15  ;;  %v33_v23 = vld [vmem:[%s721_s2] sm:$0xff]  ;;  %s599_s27 = smov [#allocation3]  }
   0x7   :  { %569 = vperm.xlu0 %567, %v568_v6   ;;  %v513_v11 = vsel %vm147_vm7, 1.0, %v597_v2  ;;  %v512_v12 = vsel %vm133_vm8, 1.0, %v597_v2  ;;  %v514_v14 = vsel %vm161_vm9, 1.0, %v597_v2  ;;  %543 = vmatpush3.msra.mxu1 %v175_v16  ;;  %vm179_vm10 = vcmask 130048   ;;  %v329_v13 = vld [vmem:[%s724_s5] sm:$0xff]  ;;  %s497_s28 = sshll.u32 %s599_s27, 4  ;;  %s498_s28 = int_to_ptr.vmem [resolvable:$true] %s497_s28 }
   0x8   :  { %vm598_vm11 = vmmov 0   ;;  %535 = vmatprep.subr.mxu0 %v597_v2  ;;  %558 = vmatprep.subr.mxu1 %v597_v2  ;;  %v43_v19 = vlaneseq  ;;  %vm333_vm13 = vcmask 261120   ;;  %vm489_vm15 = vcmask 57344   ;;  %s574_s1 = scalar_lea.vmem %s498_s28, 16  ;;  %s578_s29 = scalar_lea.vmem %s498_s28, 32 }
   0x9   :  { %96 = vperm.xlu1 %573, %v509_v7   ;;  %544 = vmatprep.mubr.msk.f32.mxu1 %vm598_vm11, %v597_v2  ;;  %p575_p0 = scmp.ne.s32.totalorder %s498_s28, %s574_s1  ;;  %p579_p1 = scmp.lt.s32.totalorder %s498_s28, %s498_s28 }
   0xa   :  { %545 = vmatmul.mubr.msk.f32.vlgmr.msra.gmra.mxu1 %vm179_vm10, %v31_v17  ;;  %536 = vmatpush3.msra.mxu0 %v177_v18  ;;  %v44_v20 = vshrl.u32 %v43_v19, 7  ;;  %p580_p2 = scmp.lt.s32.totalorder %s578_s29, %s574_s1 }
   0xb   :  { %68 = vperm.xlu0 %567, %v507_v8   ;;  %537 = vmatprep.mubr.msk.f32.mxu0 %vm598_vm11, %v597_v2  ;;  %v332_v8 = vld [vmem:[%s724_s5 + $0x18] sm:$0xff] }
   0xc   :  { %547 = vmatprep.subr.mxu0 %v597_v2  ;;  %560 = vmatprep.mubr.msk.f32.mxu1 %vm598_vm11, %v597_v2  ;;  %v45_v21 = vsub.s32 0, %v44_v20  ;;  %v59_v22 = vsub.s32 1, %v44_v20  ;;  %v73_v24 = vsub.s32 2, %v44_v20  ;;  %v87_v26 = vsub.s32 3, %v44_v20  ;;  %p581_p3 = por %p580_p2, %p579_p1 }
   0xd   :  { %124 = vperm.xlu1 %573, %v511_v9   ;;  %v101_v32 = vsub.s32 4, %v44_v20  ;;  %v115_v38 = vsub.s32 5, %v44_v20  ;;  %v129_v43 = vsub.s32 6, %v44_v20  ;;  %v143_v47 = vsub.s32 7, %v44_v20 }
   0xe   :  { %v46_v27 = vrot.slane %v33_v23, %v45_v21  ;;  %v60_v28 = vrot.slane %v33_v23, %v59_v22  ;;  %v74_v33 = vrot.slane %v33_v23, %v73_v24  ;;  %v88_v35 = vrot.slane %v33_v23, %v87_v26  ;;  %p582_p4 = pnand %p581_p3, %p575_p0 }
   0xf   :  { %110 = vperm.xlu0 %567, %v510_v10   ;;  %v102_v40 = vrot.slane %v33_v23, %v101_v32  ;;  %v116_v46 = vrot.slane %v33_v23, %v115_v38  ;;  %v130_v52 = vrot.slane %v33_v23, %v129_v43  ;;  %v144_v56 = vrot.slane %v33_v23, %v143_v47  ;;  %v331_v10 = vld [vmem:[%s724_s5 + $0x10] sm:$0xff] }
  0x10   :  { %v158_v60 = vrot.slane %v34_v53, %v45_v21  ;;  %v172_v0 = vrot.slane %v34_v53, %v59_v22  ;;  %v412_v23 = vstv %s726_s7 }
  0x11   :  { %152 = vperm.xlu1 %573, %v513_v11  }
  0x13   :  { %138 = vperm.xlu0 %567, %v512_v12   ;;  %v330_v12 = vld [vmem:[%s724_s5 + $0x8] sm:$0xff] }
  0x17   :  { %166 = vperm.xlu0 %567, %v514_v14  }
  0x80   :  { %v83_v25 = vpop.permute.xlu1 %82 }
  0x81   :  { %v89_v44 = vmul.f32 %v88_v35, %v83_v25 }
  0x82   :  { %v570_v29 = vpop.permute.xlu0 %569 }
  0x83   :  { %v572_v30 = vunpack.i.h.bf16 %v570_v29  ;;  %v571_v31 = vunpack.i.l.bf16 %v570_v29 }
  0x84   :  { %v97_v34 = vpop.permute.xlu1 %96 }
  0x85   :  { %v61_v36 = vmul.f32 %v572_v30, %v60_v28  ;;  %v47_v37 = vmul.f32 %v571_v31, %v46_v27  ;;  %v103_v50 = vmul.f32 %v102_v40, %v97_v34 }
  0x86   :  { %v69_v39 = vpop.permute.xlu0 %68 }
  0x87   :  { %v62_v41 = vadd.f32 %v61_v36, %v47_v37  ;;  %v75_v42 = vmul.f32 %v74_v33, %v69_v39 }
  0x88   :  { %v125_v48 = vpop.permute.xlu1 %124 }
  0x89   :  { %v76_v45 = vadd.f32 %v75_v42, %v62_v41  ;;  %v131_v58 = vmul.f32 %v130_v52, %v125_v48 }
  0x8a   :  { %v111_v49 = vpop.permute.xlu0 %110 }
  0x8b   :  { %v90_v51 = vadd.f32 %v89_v44, %v76_v45  ;;  %v117_v55 = vmul.f32 %v116_v46, %v111_v49 }
  0x8c   :  { %v153_v61 = vpop.permute.xlu1 %152 }
  0x8d   :  { %v104_v54 = vadd.f32 %v103_v50, %v90_v51  ;;  %v159_v3 = vmul.f32 %v158_v60, %v153_v61 }
  0x8e   :  { %v139_v57 = vpop.permute.xlu0 %138 }
  0x8f   :  { %v118_v59 = vadd.f32 %v117_v55, %v104_v54  ;;  %v145_v63 = vmul.f32 %v144_v56, %v139_v57 }
  0x91   :  { %v132_v62 = vadd.f32 %v131_v58, %v118_v59 }
  0x92   :  { %v167_v1 = vpop.permute.xlu0 %166 }
  0x93   :  { %v146_v4 = vadd.f32 %v145_v63, %v132_v62  ;;  %v173_v6 = vmul.f32 %v172_v0, %v167_v1 }
  0x95   :  { %v160_v5 = vadd.f32 %v159_v3, %v146_v4 }
  0x97   :  { %v174_v7 = vadd.f32 %v173_v6, %v160_v5 }
  0x99   :  { %538 = vmatmul.mubr.msk.f32.vlgmr.msra.gmra.mxu0 %vm179_vm10, %v174_v7 }
  0x9a   :  { %548 = vmatpush3.msra.mxu0 %v332_v8  ;;  %555 = vmatprep.mubr.msk.f32.mxu0 %vm598_vm11, %v597_v2 }
  0x9b   :  { %549 = vmatprep.subr.mxu0 %v597_v2 }
  0x9c   :  { %550 = vmatpush3.msra.mxu0 %v331_v10 }
  0x9d   :  { %551 = vmatprep.subr.mxu0 %v597_v2 }
  0x9e   :  { %552 = vmatpush3.msra.mxu0 %v330_v12 }
  0x9f   :  { %553 = vmatprep.subr.mxu0 %v597_v2  ;;  %v410_v2 = vld [vmem:[%s725_s6] sm:$0x1] }
  0xa0   :  { %554 = vmatpush3.msra.mxu0 %v329_v13 }
  0xca   :  { %v322_v9 = vpop.f32.mrf.mxu1 }
  0xcc   :  { %v546_v11 = vpop.f32.mrf.mxu1 }
 0x159   :  { %v249_v14 = vpop.f32.mrf.mxu0 }
 0x15a   :  { %v323_v15 = vadd.f32 %v322_v9, %v249_v14 }
 0x15b   :  { %v539_v16 = vpop.f32.mrf.mxu0 }
 0x15c   :  { %vm326_vm12 = vcmp.ge.f32.partialorder %v323_v15, 0.0  ;;  %v327_v17 = vmul.f32 0.2, %v323_v15 }
 0x15e   :  { %v328_v18 = vsel %vm326_vm12, %v323_v15, %v327_v17 }
 0x15f   :  { %556 = vmatmul.mubr.msk.f32.vlgmr.msra.gmra.mxu0 %vm333_vm13, %v328_v18 }
 0x21f   :  { %v403_v19 = vpop.f32.mrf.mxu0 }
 0x220   :  { %vm407_vm14 = vcmp.ge.f32.partialorder %v403_v19, 0.0  ;;  %v408_v20 = vmul.f32 0.2, %v403_v19 }
 0x221   :  { %v557_v21 = vpop.f32.mrf.mxu0 }
 0x222   :  { %v409_v22 = vsel %vm407_vm14, %v403_v19, %v408_v20 }
 0x223   :  { %559 = vmatpush3.xpose.msk.msra.mxu1 %vm333_vm13, %v409_v22 }
 0x226   :  { %561 = vmatmul.mubr.msk.f32.vlgmr.msra.gmra.mxu1 %vm333_vm13, %v410_v2 }
 0x2e6   :  { %v485_v24 = vpop.f32.mrf.mxu1 }
 0x2e7   :  { %v486_v25 = vadd.f32 %v485_v24, %v412_v23 }
 0x2e8   :  { %v562_v26 = vpop.f32.mrf.mxu1 }
 0x2e9   :  { %490 = vst.msk [vmem:[#allocation3] sm:$0x1] %vm489_vm15, %v486_v25 }
 0x2ea   :  { %585 = shalt.err (!%p582_p4)
}
 0x2eb   :  { %500 = dma.vmem_to_hbm [thread:$0]  %s498_s28, 16, %s727_s8, [#allocation4]  }
 0x2ec   :  { %594 = dma.done.wait [#allocation4], 16  }
 0x2ed   :  { %595 = vsyncadd [#allocation4], 4294967280 }
 0x2ee   :  { %504 = vsyncpa [#allocation4], 1 }

</bundles_post_ra>
